<compile_context>
chip_gen: v7x
topology: tpu7x:2x2x1
jax: 0.10.0
libtpu: 0.0.40
codegen_flags: <defaults>
</compile_context>

<pallas_src>
import jax
import jax.numpy as jnp
from jax.experimental import pallas as pl
from jax.experimental.pallas import tpu as pltpu


def ffn_kernel(x_ref, w_in_ref, b_in_ref, w_out_ref, b_out_ref, o_ref):
    # x_ref: (tm, Hp), w_in_ref: (Hp, Fp), b_in_ref: (1, Fp),
    # w_out_ref: (Fp, Hp), b_out_ref: (1, Hp), o_ref: (tm, Hp)
    x = x_ref[...]  # native dtype into the MXU

    # First linear: x @ W_in (+ b_in), f32 accumulation on the MXU.
    h = jnp.dot(x, w_in_ref[...], preferred_element_type=jnp.float32)
    h = h + b_in_ref[...].astype(jnp.float32)

    # LeakyReLU, PyTorch default negative_slope = 0.01 (epilogue kept in f32).
    h = jnp.where(h >= 0, h, 0.01 * h)

    # Second linear: back to native dtype for the MXU, accumulate in f32.
    h = h.astype(x_ref.dtype)
    out = jnp.dot(h, w_out_ref[...], preferred_element_type=jnp.float32)
    out = out + b_out_ref[...].astype(jnp.float32)

    o_ref[...] = out.astype(o_ref.dtype)


def _round_up(x, m):
    return (x + m - 1) // m * m


def position_wise_feed_forward(h_V, w_in, b_in, w_out, b_out, *, tm=512):
    """h_V: (..., num_hidden). Returns same shape/dtype as h_V."""
    orig_shape = h_V.shape
    H = orig_shape[-1]
    F = w_in.shape[1]
    x2d = h_V.reshape(-1, H)
    N = x2d.shape[0]
    dtype = h_V.dtype

    # Lane-dense feature padding (multiples of 128 lanes).
    Hp = _round_up(H, 128)
    Fp = _round_up(F, 128)

    # Row tile: multiple of 16 sublanes (safe for bf16 packing), shrunk for tiny N
    # so the toy case doesn't burn a full 512-row tile of zeros.
    tm_eff = _round_up(min(tm, _round_up(N, 16)), 16)
    Np = _round_up(N, tm_eff)

    x_pad = jnp.pad(x2d, ((0, Np - N), (0, Hp - H)))
    w_in_p = jnp.pad(w_in, ((0, Hp - H), (0, Fp - F)))
    b_in_p = jnp.pad(b_in.reshape(1, F), ((0, 0), (0, Fp - F)))
    w_out_p = jnp.pad(w_out, ((0, Fp - F), (0, Hp - H)))
    b_out_p = jnp.pad(b_out.reshape(1, H), ((0, 0), (0, Hp - H)))

    grid = (Np // tm_eff,)

    itemsize = jnp.dtype(dtype).itemsize
    flops = 4 * Np * Hp * Fp  # two (Np,Hp)x(Hp/Fp) GEMMs
    bytes_accessed = itemsize * (
        x_pad.size + w_in_p.size + b_in_p.size + w_out_p.size + b_out_p.size
        + Np * Hp)

    def _run(weight_pipeline_mode):
        def wspec(shape):
            if weight_pipeline_mode is None:
                return pl.BlockSpec(shape, lambda i: (0, 0))
            return pl.BlockSpec(shape, lambda i: (0, 0),
                                pipeline_mode=weight_pipeline_mode)

        return pl.pallas_call(
            ffn_kernel,
            out_shape=jax.ShapeDtypeStruct((Np, Hp), dtype),
            grid_spec=pltpu.PrefetchScalarGridSpec(
                num_scalar_prefetch=0,
                grid=grid,
                in_specs=[
                    pl.BlockSpec((tm_eff, Hp), lambda i: (i, 0)),  # x row-tile
                    wspec((Hp, Fp)),                               # W_in (resident)
                    wspec((1, Fp)),                                # b_in
                    wspec((Fp, Hp)),                               # W_out (resident)
                    wspec((1, Hp)),                                # b_out
                ],
                out_specs=pl.BlockSpec((tm_eff, Hp), lambda i: (i, 0)),
            ),
            compiler_params=pltpu.CompilerParams(
                dimension_semantics=("parallel",),
                vmem_limit_bytes=64 * 1024 * 1024),
            cost_estimate=pl.CostEstimate(
                flops=flops, transcendentals=0, bytes_accessed=bytes_accessed),
        )(x_pad, w_in_p, b_in_p, w_out_p, b_out_p)

    try:
        # Weights/biases have a constant block index -> single-buffer them to
        # halve their resident VMEM footprint.
        out = _run(pl.Buffered(1))
    except Exception:
        # Fallback for JAX versions where single-buffered pipeline_mode is not
        # supported in grid-based pallas_call.
        out = _run(None)

    return out[:N, :H].reshape(orig_shape)


def init_params(key, num_hidden, num_ff, dtype=jnp.float32):
    """Deterministic init mimicking nn.Linear default (uniform +/- 1/sqrt(fan_in)).
    Weights are stored transposed relative to PyTorch: (in_features, out_features)."""
    k1, k2, k3, k4 = jax.random.split(key, 4)
    bound_in = 1.0 / (num_hidden ** 0.5)
    bound_out = 1.0 / (num_ff ** 0.5)
    w_in = jax.random.uniform(k1, (num_hidden, num_ff), dtype,
                              minval=-bound_in, maxval=bound_in)
    b_in = jax.random.uniform(k2, (num_ff,), dtype,
                              minval=-bound_in, maxval=bound_in)
    w_out = jax.random.uniform(k3, (num_ff, num_hidden), dtype,
                               minval=-bound_out, maxval=bound_out)
    b_out = jax.random.uniform(k4, (num_hidden,), dtype,
                               minval=-bound_out, maxval=bound_out)
    return w_in, b_in, w_out, b_out


def _reference(h_V, w_in, b_in, w_out, b_out):
    H = h_V.shape[-1]
    x = h_V.reshape(-1, H).astype(jnp.float32)
    h = x @ w_in.astype(jnp.float32) + b_in.astype(jnp.float32)
    h = jnp.where(h >= 0, h, 0.01 * h)
    out = h @ w_out.astype(jnp.float32) + b_out.astype(jnp.float32)
    return out.reshape(h_V.shape)


if __name__ == "__main__":
    num_hidden = 32
    num_ff = 64
    batch, seq = 2, 8

    key = jax.random.PRNGKey(0)
    k_x, k_p = jax.random.split(key)
    h_V = jax.random.normal(k_x, (batch, seq, num_hidden), jnp.float32)
    w_in, b_in, w_out, b_out = init_params(k_p, num_hidden, num_ff)

    # f32 path
    out = position_wise_feed_forward(h_V, w_in, b_in, w_out, b_out)
    out = jax.block_until_ready(out)
    ref = _reference(h_V, w_in, b_in, w_out, b_out)
    assert out.shape == h_V.shape and out.dtype == h_V.dtype
    assert jnp.allclose(out, ref, atol=1e-5, rtol=1e-5), "f32 mismatch vs reference"

    # bf16 path (native-dtype MXU feed, f32 accumulation)
    to_bf16 = lambda a: a.astype(jnp.bfloat16)
    out_bf16 = position_wise_feed_forward(
        to_bf16(h_V), to_bf16(w_in), to_bf16(b_in), to_bf16(w_out), to_bf16(b_out))
    out_bf16 = jax.block_until_ready(out_bf16)
    assert out_bf16.dtype == jnp.bfloat16
    assert jnp.allclose(out_bf16.astype(jnp.float32), ref, atol=1e-1, rtol=1e-1), \
        "bf16 mismatch vs reference"

    print("KERNEL_OK")
</pallas_src>

<mosaic_0001>
module attributes {stable_mosaic.version = 11 : i64} {
  func.func @ffn_kernel(%arg0: i32, %arg1: memref<16x128xf32, #tpu.memory_space<vmem>>, %arg2: memref<128x128xf32, #tpu.memory_space<vmem>>, %arg3: memref<1x128xf32, #tpu.memory_space<vmem>>, %arg4: memref<128x128xf32, #tpu.memory_space<vmem>>, %arg5: memref<1x128xf32, #tpu.memory_space<vmem>>, %arg6: memref<16x128xf32, #tpu.memory_space<vmem>>) attributes {dimension_semantics = [#tpu.dimension_semantics<parallel>], iteration_bounds = array<i64: 1>, scalar_prefetch = 0 : i64, scratch_operands = 0 : i64, tpu.core_type = #tpu.core_type<tc>, window_params = [{transform_indices = @transform_0, window_bounds = array<i64: 16, 128>}, {pipeline_mode = #tpu.pipeline_mode<synchronous>, transform_indices = @transform_1, window_bounds = array<i64: 128, 128>}, {pipeline_mode = #tpu.pipeline_mode<synchronous>, transform_indices = @transform_2, window_bounds = array<i64: 1, 128>}, {pipeline_mode = #tpu.pipeline_mode<synchronous>, transform_indices = @transform_3, window_bounds = array<i64: 128, 128>}, {pipeline_mode = #tpu.pipeline_mode<synchronous>, transform_indices = @transform_4, window_bounds = array<i64: 1, 128>}, {transform_indices = @transform_5, window_bounds = array<i64: 16, 128>}]} {
    %c0 = arith.constant 0 : index
    %c0_0 = arith.constant 0 : index
    %0 = vector.load %arg1[%c0, %c0_0] : memref<16x128xf32, #tpu.memory_space<vmem>>, vector<16x128xf32>
    %c0_1 = arith.constant 0 : index
    %c0_2 = arith.constant 0 : index
    %1 = vector.load %arg2[%c0_1, %c0_2] : memref<128x128xf32, #tpu.memory_space<vmem>>, vector<128x128xf32>
    %cst = arith.constant dense<0.000000e+00> : vector<16x128xf32>
    %2 = tpu.matmul %0, %1, %cst {dimension_numbers = #tpu.dot_dimension_numbers<[1], [0], [0], [1], [0, 0, 1, 1], [], []>} : vector<16x128xf32>, vector<128x128xf32>, vector<16x128xf32> -> vector<16x128xf32>
    %c0_3 = arith.constant 0 : index
    %c0_4 = arith.constant 0 : index
    %3 = vector.load %arg3[%c0_3, %c0_4] : memref<1x128xf32, #tpu.memory_space<vmem>>, vector<1x128xf32>
    %4 = vector.broadcast %3 : vector<1x128xf32> to vector<16x128xf32>
    %5 = arith.addf %2, %4 : vector<16x128xf32>
    %cst_5 = arith.constant 0.000000e+00 : f32
    %6 = vector.broadcast %cst_5 : f32 to vector<16x128xf32>
    %7 = arith.cmpf oge, %5, %6 : vector<16x128xf32>
    %cst_6 = arith.constant 0.00999999977 : f32
    %8 = vector.broadcast %cst_6 : f32 to vector<16x128xf32>
    %9 = arith.mulf %8, %5 : vector<16x128xf32>
    %10 = arith.select %7, %5, %9 : vector<16x128xi1>, vector<16x128xf32>
    %c0_7 = arith.constant 0 : index
    %c0_8 = arith.constant 0 : index
    %11 = vector.load %arg4[%c0_7, %c0_8] : memref<128x128xf32, #tpu.memory_space<vmem>>, vector<128x128xf32>
    %cst_9 = arith.constant dense<0.000000e+00> : vector<16x128xf32>
    %12 = tpu.matmul %10, %11, %cst_9 {dimension_numbers = #tpu.dot_dimension_numbers<[1], [0], [0], [1], [0, 0, 1, 1], [], []>} : vector<16x128xf32>, vector<128x128xf32>, vector<16x128xf32> -> vector<16x128xf32>
    %c0_10 = arith.constant 0 : index
    %c0_11 = arith.constant 0 : index
    %13 = vector.load %arg5[%c0_10, %c0_11] : memref<1x128xf32, #tpu.memory_space<vmem>>, vector<1x128xf32>
    %14 = vector.broadcast %13 : vector<1x128xf32> to vector<16x128xf32>
    %15 = arith.addf %12, %14 : vector<16x128xf32>
    %c0_12 = arith.constant 0 : index
    %c0_13 = arith.constant 0 : index
    %16 = vector.load %arg6[%c0_12, %c0_13] : memref<16x128xf32, #tpu.memory_space<vmem>>, vector<16x128xf32>
    tpu.vector_store %arg6[%c0_12, %c0_13], %15 {strides = array<i32>} : memref<16x128xf32, #tpu.memory_space<vmem>>, vector<16x128xf32>,
    return
  }
  func.func @transform_0(%arg0: i32) -> (i32, i32) {
    %c0_i32 = arith.constant 0 : i32
    %c0_i32_0 = arith.constant 0 : i32
    return %arg0, %c0_i32 : i32, i32
  }
  func.func @transform_1(%arg0: i32) -> (i32, i32) {
    %c0_i32 = arith.constant 0 : i32
    %c0_i32_0 = arith.constant 0 : i32
    %c0_i32_1 = arith.constant 0 : i32
    return %c0_i32, %c0_i32_0 : i32, i32
  }
  func.func @transform_2(%arg0: i32) -> (i32, i32) {
    %c0_i32 = arith.constant 0 : i32
    %c0_i32_0 = arith.constant 0 : i32
    %c0_i32_1 = arith.constant 0 : i32
    return %c0_i32, %c0_i32_0 : i32, i32
  }
  func.func @transform_3(%arg0: i32) -> (i32, i32) {
    %c0_i32 = arith.constant 0 : i32
    %c0_i32_0 = arith.constant 0 : i32
    %c0_i32_1 = arith.constant 0 : i32
    return %c0_i32, %c0_i32_0 : i32, i32
  }
  func.func @transform_4(%arg0: i32) -> (i32, i32) {
    %c0_i32 = arith.constant 0 : i32
    %c0_i32_0 = arith.constant 0 : i32
    %c0_i32_1 = arith.constant 0 : i32
    return %c0_i32, %c0_i32_0 : i32, i32
  }
  func.func @transform_5(%arg0: i32) -> (i32, i32) {
    %c0_i32 = arith.constant 0 : i32
    %c0_i32_0 = arith.constant 0 : i32
    return %arg0, %c0_i32 : i32, i32
  }
}

module attributes {stable_mosaic.version = 11 : i64} {
  func.func @ffn_kernel(%arg0: i32, %arg1: memref<16x128xf32, #tpu.memory_space<vmem>>, %arg2: memref<128x128xf32, #tpu.memory_space<vmem>>, %arg3: memref<1x128xf32, #tpu.memory_space<vmem>>, %arg4: memref<128x128xf32, #tpu.memory_space<vmem>>, %arg5: memref<1x128xf32, #tpu.memory_space<vmem>>, %arg6: memref<16x128xf32, #tpu.memory_space<vmem>>) attributes {dimension_semantics = [#tpu.dimension_semantics<parallel>], iteration_bounds = array<i64: 1>, scalar_prefetch = 0 : i64, scratch_operands = 0 : i64, tpu.core_type = #tpu.core_type<tc>, window_params = [{transform_indices = @transform_0, window_bounds = array<i64: 16, 128>}, {pipeline_mode = #tpu.pipeline_mode<synchronous>, transform_indices = @transform_1, window_bounds = array<i64: 128, 128>}, {pipeline_mode = #tpu.pipeline_mode<synchronous>, transform_indices = @transform_2, window_bounds = array<i64: 1, 128>}, {pipeline_mode = #tpu.pipeline_mode<synchronous>, transform_indices = @transform_3, window_bounds = array<i64: 128, 128>}, {pipeline_mode = #tpu.pipeline_mode<synchronous>, transform_indices = @transform_4, window_bounds = array<i64: 1, 128>}, {transform_indices = @transform_5, window_bounds = array<i64: 16, 128>}]} {
    %c0 = arith.constant 0 : index
    %c0_0 = arith.constant 0 : index
    %0 = vector.load %arg1[%c0, %c0_0] : memref<16x128xf32, #tpu.memory_space<vmem>>, vector<16x128xf32>
    %c0_1 = arith.constant 0 : index
    %c0_2 = arith.constant 0 : index
    %1 = vector.load %arg2[%c0_1, %c0_2] : memref<128x128xf32, #tpu.memory_space<vmem>>, vector<128x128xf32>
    %cst = arith.constant dense<0.000000e+00> : vector<16x128xf32>
    %2 = tpu.matmul %0, %1, %cst {dimension_numbers = #tpu.dot_dimension_numbers<[1], [0], [0], [1], [0, 0, 1, 1], [], []>} : vector<16x128xf32>, vector<128x128xf32>, vector<16x128xf32> -> vector<16x128xf32>
    %c0_3 = arith.constant 0 : index
    %c0_4 = arith.constant 0 : index
    %3 = vector.load %arg3[%c0_3, %c0_4] : memref<1x128xf32, #tpu.memory_space<vmem>>, vector<1x128xf32>
    %4 = vector.broadcast %3 : vector<1x128xf32> to vector<16x128xf32>
    %5 = arith.addf %2, %4 : vector<16x128xf32>
    %cst_5 = arith.constant 0.000000e+00 : f32
    %6 = vector.broadcast %cst_5 : f32 to vector<16x128xf32>
    %7 = arith.cmpf oge, %5, %6 : vector<16x128xf32>
    %cst_6 = arith.constant 0.00999999977 : f32
    %8 = vector.broadcast %cst_6 : f32 to vector<16x128xf32>
    %9 = arith.mulf %8, %5 : vector<16x128xf32>
    %10 = arith.select %7, %5, %9 : vector<16x128xi1>, vector<16x128xf32>
    %c0_7 = arith.constant 0 : index
    %c0_8 = arith.constant 0 : index
    %11 = vector.load %arg4[%c0_7, %c0_8] : memref<128x128xf32, #tpu.memory_space<vmem>>, vector<128x128xf32>
    %cst_9 = arith.constant dense<0.000000e+00> : vector<16x128xf32>
    %12 = tpu.matmul %10, %11, %cst_9 {dimension_numbers = #tpu.dot_dimension_numbers<[1], [0], [0], [1], [0, 0, 1, 1], [], []>} : vector<16x128xf32>, vector<128x128xf32>, vector<16x128xf32> -> vector<16x128xf32>
    %c0_10 = arith.constant 0 : index
    %c0_11 = arith.constant 0 : index
    %13 = vector.load %arg5[%c0_10, %c0_11] : memref<1x128xf32, #tpu.memory_space<vmem>>, vector<1x128xf32>
    %14 = vector.broadcast %13 : vector<1x128xf32> to vector<16x128xf32>
    %15 = arith.addf %12, %14 : vector<16x128xf32>
    %c0_12 = arith.constant 0 : index
    %c0_13 = arith.constant 0 : index
    %16 = vector.load %arg6[%c0_12, %c0_13] : memref<16x128xf32, #tpu.memory_space<vmem>>, vector<16x128xf32>
    tpu.vector_store %arg6[%c0_12, %c0_13], %15 {strides = array<i32>} : memref<16x128xf32, #tpu.memory_space<vmem>>, vector<16x128xf32>,
    return
  }
  func.func @transform_0(%arg0: i32) -> (i32, i32) {
    %c0_i32 = arith.constant 0 : i32
    %c0_i32_0 = arith.constant 0 : i32
    return %arg0, %c0_i32 : i32, i32
  }
  func.func @transform_1(%arg0: i32) -> (i32, i32) {
    %c0_i32 = arith.constant 0 : i32
    %c0_i32_0 = arith.constant 0 : i32
    %c0_i32_1 = arith.constant 0 : i32
    return %c0_i32, %c0_i32_0 : i32, i32
  }
  func.func @transform_2(%arg0: i32) -> (i32, i32) {
    %c0_i32 = arith.constant 0 : i32
    %c0_i32_0 = arith.constant 0 : i32
    %c0_i32_1 = arith.constant 0 : i32
    return %c0_i32, %c0_i32_0 : i32, i32
  }
  func.func @transform_3(%arg0: i32) -> (i32, i32) {
    %c0_i32 = arith.constant 0 : i32
    %c0_i32_0 = arith.constant 0 : i32
    %c0_i32_1 = arith.constant 0 : i32
    return %c0_i32, %c0_i32_0 : i32, i32
  }
  func.func @transform_4(%arg0: i32) -> (i32, i32) {
    %c0_i32 = arith.constant 0 : i32
    %c0_i32_0 = arith.constant 0 : i32
    %c0_i32_1 = arith.constant 0 : i32
    return %c0_i32, %c0_i32_0 : i32, i32
  }
  func.func @transform_5(%arg0: i32) -> (i32, i32) {
    %c0_i32 = arith.constant 0 : i32
    %c0_i32_0 = arith.constant 0 : i32
    return %arg0, %c0_i32 : i32, i32
  }
}

</mosaic_0001>

<bundles_post_ra>
// kernel: tpu_custom_call.1
= control target key start
LH: loop header
LB: loop body
LE: loop exit
PB: predicated region body
PF: predicated region fallthrough
CT: control target
= control target key end

     0   :  { %10 = vsyncpa [#allocation3], 0  ;;  %s759_s0 = inlined_call_operand.hbm [shape: f32[16,128], index: 0, kind: input, shape index: {}]   ;;  %s760_s1 = inlined_call_operand.hbm [shape: f32[128,128], index: 1, kind: input, shape index: {}]   ;;  %s761_s2 = inlined_call_operand.hbm [shape: f32[1,128], index: 2, kind: input, shape index: {}]   ;;  %s762_s3 = inlined_call_operand.hbm [shape: f32[128,128], index: 3, kind: input, shape index: {}]   ;;  %s763_s4 = inlined_call_operand.hbm [shape: f32[1,128], index: 4, kind: input, shape index: {}]   ;;  %s764_s5 = inlined_call_operand.hbm [shape: f32[16,128], index: 5, kind: output, shape index: {}]  }
   0x1   :  { %11 = vsyncpa [#allocation6], 0 }
   0x2   :  { %12 = vsyncpa [#allocation9], 0 }
   0x3   :  { %13 = vsyncpa [#allocation4], 0  ;;  %s630_s18 = smov [#allocation5]   ;;  %s631_s20 = smov [#allocation8]  }
   0x4   :  { %s31_s19 = sshll.u32 %s630_s18, 4  ;;  %s53_s21 = sshll.u32 %s631_s20, 4  ;;  %s32_s19 = int_to_ptr.vmem [resolvable:$true] %s31_s19  ;;  %s668_s21 = int_to_ptr.vmem [resolvable:$true] %s53_s21 }
   0x5   :  { %s490_s24 = scalar_lea.hbm %s760_s1, 2048 }
   0x6   :  { %p491_p0 = scmp.ne.s32.totalorder %s760_s1, %s490_s24  ;;  %p494_p1 = scmp.lt.u32.totalorder %s490_s24, %s760_s1 }
   0x8   :  { %p496_p2 = pnand %p494_p1, %p491_p0 }
   0xa   :  { %499 = shalt.err (!%p496_p2)
}
   0xb   :  { %s500_s29 = scalar_lea.vmem %s32_s19, 2048  ;;  %p505_p4 = scmp.lt.s32.totalorder %s32_s19, %s32_s19 }
   0xc   :  { %p501_p3 = scmp.ne.s32.totalorder %s32_s19, %s500_s29  ;;  %p506_p5 = scmp.lt.s32.totalorder %s500_s29, %s500_s29 }
   0xe   :  { %p507_p6 = por %p506_p5, %p505_p4 }
  0x10   :  { %p508_p7 = pnand %p507_p6, %p501_p3 }
  0x12   :  { %511 = shalt.err (!%p508_p7)
}
  0x13   :  { %s632_s30 = smov 128   ;;  %s633_s6 = smov 8  }
  0x14   :  { %37 = dma.hbm_to_vmem [thread:$0]  %s760_s1, 2048, %s32_s19, [#allocation6], %s632_s30, %s632_s30, %s633_s6  }
  0x15   :  { %s512_s11 = scalar_lea.hbm %s762_s3, 2048 }
  0x16   :  { %p513_p8 = scmp.ne.s32.totalorder %s762_s3, %s512_s11  ;;  %p516_p9 = scmp.lt.u32.totalorder %s512_s11, %s762_s3 }
  0x18   :  { %p518_p10 = pnand %p516_p9, %p513_p8 }
  0x1a   :  { %521 = shalt.err (!%p518_p10)
}
  0x1b   :  { %s522_s16 = scalar_lea.vmem %s668_s21, 2048  ;;  %p527_p12 = scmp.lt.s32.totalorder %s668_s21, %s668_s21 }
  0x1c   :  { %p523_p11 = scmp.ne.s32.totalorder %s668_s21, %s522_s16  ;;  %p528_p13 = scmp.lt.s32.totalorder %s522_s16, %s522_s16 }
  0x1e   :  { %p529_p0 = por %p528_p13, %p527_p12 }
  0x20   :  { %p530_p1 = pnand %p529_p0, %p523_p11 }
  0x22   :  { %533 = shalt.err (!%p530_p1)
}
  0x23   :  { %59 = dma.hbm_to_vmem [thread:$0]  %s762_s3, 2048, %s668_s21, [#allocation9], %s632_s30, %s632_s30, %s633_s6  }
  0x24   :  { %s634_s18 = smov [#allocation2]   ;;  %s635_s20 = smov [#allocation7]  }
  0x25   :  { %s19_s19 = sshll.u32 %s634_s18, 4  ;;  %s44_s22 = sshll.u32 %s635_s20, 4  ;;  %s20_s19 = int_to_ptr.vmem [resolvable:$true] %s19_s19  ;;  %s45_s22 = int_to_ptr.vmem [resolvable:$true] %s44_s22 }
  0x26   :  { %s534_s25 = scalar_lea.hbm %s759_s0, 256 }
  0x27   :  { %p535_p2 = scmp.ne.s32.totalorder %s759_s0, %s534_s25  ;;  %p538_p3 = scmp.lt.u32.totalorder %s534_s25, %s759_s0 }
  0x29   :  { %p540_p4 = pnand %p538_p3, %p535_p2 }
  0x2b   :  { %543 = shalt.err (!%p540_p4)
}
  0x2c   :  { %s544_s3 = scalar_lea.vmem %s20_s19, 256  ;;  %p549_p6 = scmp.lt.s32.totalorder %s20_s19, %s20_s19 }
  0x2d   :  { %p545_p5 = scmp.ne.s32.totalorder %s20_s19, %s544_s3  ;;  %p550_p7 = scmp.lt.s32.totalorder %s544_s3, %s544_s3 }
  0x2f   :  { %p551_p8 = por %p550_p7, %p549_p6 }
  0x31   :  { %p552_p9 = pnand %p551_p8, %p545_p5 }
  0x33   :  { %555 = shalt.err (!%p552_p9)
}
  0x34   :  { %25 = dma.hbm_to_vmem [thread:$0]  %s759_s0, 256, %s20_s19, [#allocation3], %s632_s30, %s632_s30, %s633_s6  }
  0x35   :  { %s556_s10 = scalar_lea.hbm %s761_s2, 16 }
  0x36   :  { %p557_p10 = scmp.ne.s32.totalorder %s761_s2, %s556_s10  ;;  %p560_p11 = scmp.lt.u32.totalorder %s556_s10, %s761_s2 }
  0x38   :  { %p562_p12 = pnand %p560_p11, %p557_p10 }
  0x3a   :  { %565 = shalt.err (!%p562_p12)
}
  0x3b   :  { %s566_s15 = scalar_lea.vmem %s45_s22, 16  ;;  %s570_s16 = scalar_lea.vmem %s45_s22, 32 }
  0x3c   :  { %p567_p13 = scmp.ne.s32.totalorder %s45_s22, %s566_s15  ;;  %p571_p0 = scmp.lt.s32.totalorder %s45_s22, %s45_s22 }
  0x3d   :  { %p572_p1 = scmp.lt.s32.totalorder %s570_s16, %s566_s15 }
  0x3f   :  { %p573_p2 = por %p572_p1, %p571_p0 }
  0x41   :  { %p574_p3 = pnand %p573_p2, %p567_p13 }
  0x43   :  { %577 = shalt.err (!%p574_p3)
}
  0x44   :  { %47 = dma.hbm_to_vmem [thread:$0]  %s761_s2, 16, %s45_s22, [#allocation6]  }
  0x45   :  { %s636_s17 = smov [#allocation10]   ;;  %s578_s23 = scalar_lea.hbm %s763_s4, 16 }
  0x46   :  { %s66_s18 = sshll.u32 %s636_s17, 4  ;;  %p579_p4 = scmp.ne.s32.totalorder %s763_s4, %s578_s23  ;;  %s67_s18 = int_to_ptr.vmem [resolvable:$true] %s66_s18 }
  0x47   :  { %p582_p5 = scmp.lt.u32.totalorder %s578_s23, %s763_s4 }
  0x49   :  { %p584_p6 = pnand %p582_p5, %p579_p4 }
  0x4b   :  { %587 = shalt.err (!%p584_p6)
}
  0x4c   :  { %s588_s28 = scalar_lea.vmem %s67_s18, 16  ;;  %s592_s2 = scalar_lea.vmem %s67_s18, 32 }
  0x4d   :  { %p589_p7 = scmp.ne.s32.totalorder %s67_s18, %s588_s28  ;;  %p593_p8 = scmp.lt.s32.totalorder %s67_s18, %s67_s18 }
  0x4e   :  { %p594_p9 = scmp.lt.s32.totalorder %s592_s2, %s588_s28 }
  0x50   :  { %p595_p10 = por %p594_p9, %p593_p8 }
  0x52   :  { %p596_p11 = pnand %p595_p10, %p589_p7 }
  0x54   :  { %599 = shalt.err (!%p596_p11)
}
  0x55   :  { %69 = dma.hbm_to_vmem [thread:$0]  %s763_s4, 16, %s67_s18, [#allocation9]  }
  0x56   :  { %622 = dma.done.wait [#allocation3], 256  }
  0x57   :  { %623 = vsyncadd [#allocation3], 4294967040 }
  0x58   :  { %624 = dma.done.wait [#allocation6], 2064  }
  0x59   :  { %625 = vsyncadd [#allocation6], 4294965232 }
  0x5a   :  { %626 = dma.done.wait [#allocation9], 2064  }
  0x5b   :  { %627 = vsyncadd [#allocation9], 4294965232  ;;  %v87_v0 = vld [vmem:[#allocation5] sm:$0xff]  ;;  %v88_v1 = vld [vmem:[#allocation5 + $0x8] sm:$0xff]  ;;  %s637_s4 = smov [#allocation11]  }
  0x5c   :  { %v89_v2 = vld [vmem:[#allocation5 + $0x10] sm:$0xff]  ;;  %v418_v3 = vpack.c.bf16 %v88_v1, %v87_v0  ;;  %v90_v4 = vld [vmem:[#allocation5 + $0x18] sm:$0xff]  ;;  %v91_v6 = vld [vmem:[#allocation5 + $0x20] sm:$0xff]  ;;  %s296_s3 = sshll.u32 %s637_s4, 4  ;;  %s297_s3 = int_to_ptr.vmem [resolvable:$true] %s296_s3 }
  0x5d   :  { %v422_v5 = vpack.c.bf16 %v90_v4, %v89_v2  ;;  %v92_v7 = vld [vmem:[#allocation5 + $0x28] sm:$0xff]  ;;  %v93_v9 = vld [vmem:[#allocation5 + $0x30] sm:$0xff]  ;;  %v94_v10 = vld [vmem:[#allocation5 + $0x38] sm:$0xff]  ;;  %s600_s21 = scalar_lea.vmem %s297_s3, 256  ;;  %p605_p13 = scmp.lt.s32.totalorder %s297_s3, %s297_s3 }
  0x5e   :  { %419 = vmatprep.subr.bf16.mxu0 %v418_v3  ;;  %v426_v8 = vpack.c.bf16 %v92_v7, %v91_v6  ;;  %v85_v11 = vld [vmem:[#allocation2] sm:$0xff]  ;;  %v191_v12 = vld [vmem:[#allocation8] sm:$0xff]  ;;  %v194_v16 = vld [vmem:[#allocation8 + $0x18] sm:$0xff]  ;;  %v430_v20 = vpack.c.bf16 %v94_v10, %v93_v9  ;;  %p601_p12 = scmp.ne.s32.totalorder %s297_s3, %s600_s21  ;;  %p606_p0 = scmp.lt.s32.totalorder %s600_s21, %s600_s21 }
  0x5f   :  { %421 = vmatpush3.bf16.msra.mxu0 %v418_v3  ;;  %380 = vmatprep.mubr.f32.mxu0 %v85_v11  ;;  %v192_v13 = vld [vmem:[#allocation8 + $0x8] sm:$0xff]  ;;  %v193_v14 = vld [vmem:[#allocation8 + $0x10] sm:$0xff]  ;;  %v195_v18 = vld [vmem:[#allocation8 + $0x20] sm:$0xff] }
  0x60   :  { %423 = vmatprep.subr.bf16.mxu0 %v422_v5  ;;  %v450_v15 = vpack.c.bf16 %v192_v13, %v191_v12  ;;  %v454_v17 = vpack.c.bf16 %v194_v16, %v193_v14  ;;  %v196_v19 = vld [vmem:[#allocation8 + $0x28] sm:$0xff]  ;;  %v95_v21 = vld [vmem:[#allocation5 + $0x40] sm:$0xff]  ;;  %v197_v24 = vld [vmem:[#allocation8 + $0x30] sm:$0xff]  ;;  %p607_p1 = por %p606_p0, %p605_p13 }
  0x61   :  { %v96_v22 = vld [vmem:[#allocation5 + $0x48] sm:$0xff]  ;;  %v458_v23 = vpack.c.bf16 %v196_v19, %v195_v18  ;;  %v198_v25 = vld [vmem:[#allocation8 + $0x38] sm:$0xff]  ;;  %v97_v27 = vld [vmem:[#allocation5 + $0x50] sm:$0xff] }
  0x62   :  { %451 = vmatprep.subr.bf16.mxu1 %v450_v15  ;;  %v434_v26 = vpack.c.bf16 %v96_v22, %v95_v21  ;;  %v98_v28 = vld [vmem:[#allocation5 + $0x58] sm:$0xff]  ;;  %v462_v29 = vpack.c.bf16 %v198_v25, %v197_v24  ;;  %v199_v30 = vld [vmem:[#allocation8 + $0x40] sm:$0xff]  ;;  %v200_v31 = vld [vmem:[#allocation8 + $0x48] sm:$0xff]  ;;  %p608_p2 = pnand %p607_p1, %p601_p12 }
  0x63   :  { %425 = vmatpush3.bf16.msra.mxu0 %v422_v5  ;;  %453 = vmatpush3.bf16.msra.mxu1 %v450_v15  ;;  %v438_v32 = vpack.c.bf16 %v98_v28, %v97_v27  ;;  %v99_v33 = vld [vmem:[#allocation5 + $0x60] sm:$0xff]  ;;  %v100_v34 = vld [vmem:[#allocation5 + $0x68] sm:$0xff]  ;;  %v466_v35 = vpack.c.bf16 %v200_v31, %v199_v30  ;;  %v201_v36 = vld [vmem:[#allocation8 + $0x50] sm:$0xff] }
  0x64   :  { %427 = vmatprep.subr.bf16.mxu0 %v426_v8  ;;  %455 = vmatprep.subr.bf16.mxu1 %v454_v17  ;;  %v202_v37 = vld [vmem:[#allocation8 + $0x58] sm:$0xff]  ;;  %v442_v38 = vpack.c.bf16 %v100_v34, %v99_v33  ;;  %v101_v39 = vld [vmem:[#allocation5 + $0x70] sm:$0xff]  ;;  %v203_v44 = vld [vmem:[#allocation8 + $0x60] sm:$0xff] }
  0x65   :  { %v102_v40 = vld [vmem:[#allocation5 + $0x78] sm:$0xff]  ;;  %v470_v41 = vpack.c.bf16 %v202_v37, %v201_v36  ;;  %v204_v45 = vld [vmem:[#allocation8 + $0x68] sm:$0xff]  ;;  %v310_v50 = vld [vmem:[#allocation7] ss:$0 sm:$0xff] }
  0x66   :  { %v446_v42 = vpack.c.bf16 %v102_v40, %v101_v39  ;;  %v86_v43 = vld [vmem:[#allocation2 + $0x8] sm:$0xff]  ;;  %v474_v46 = vpack.c.bf16 %v204_v45, %v203_v44  ;;  %v311_v59 = vld [vmem:[#allocation10] ss:$0 sm:$0xff] }
  0x67   :  { %429 = vmatpush3.bf16.msra.mxu0 %v426_v8  ;;  %457 = vmatpush3.bf16.msra.mxu1 %v454_v17  ;;  %v205_v47 = vld [vmem:[#allocation8 + $0x70] sm:$0xff]  ;;  %v206_v48 = vld [vmem:[#allocation8 + $0x78] sm:$0xff] }
  0x68   :  { %431 = vmatprep.subr.bf16.mxu0 %v430_v20  ;;  %459 = vmatprep.subr.bf16.mxu1 %v458_v23  ;;  %v478_v49 = vpack.c.bf16 %v206_v48, %v205_v47 }
  0x6b   :  { %433 = vmatpush3.bf16.msra.mxu0 %v430_v20  ;;  %461 = vmatpush3.bf16.msra.mxu1 %v458_v23 }
  0x6c   :  { %435 = vmatprep.subr.bf16.mxu0 %v434_v26  ;;  %463 = vmatprep.subr.bf16.mxu1 %v462_v29 }
  0x6f   :  { %437 = vmatpush3.bf16.msra.mxu0 %v434_v26  ;;  %465 = vmatpush3.bf16.msra.mxu1 %v462_v29 }
  0x70   :  { %439 = vmatprep.subr.bf16.mxu0 %v438_v32  ;;  %467 = vmatprep.subr.bf16.mxu1 %v466_v35 }
  0x73   :  { %441 = vmatpush3.bf16.msra.mxu0 %v438_v32  ;;  %469 = vmatpush3.bf16.msra.mxu1 %v466_v35 }
  0x74   :  { %443 = vmatprep.subr.bf16.mxu0 %v442_v38  ;;  %471 = vmatprep.subr.bf16.mxu1 %v470_v41 }
  0x77   :  { %445 = vmatpush3.bf16.msra.mxu0 %v442_v38  ;;  %473 = vmatpush3.bf16.msra.mxu1 %v470_v41 }
  0x78   :  { %447 = vmatprep.subr.bf16.mxu0 %v446_v42  ;;  %475 = vmatprep.subr.bf16.mxu1 %v474_v46 }
  0x7b   :  { %449 = vmatpush3.bf16.msra.mxu0 %v446_v42  ;;  %477 = vmatpush3.bf16.msra.mxu1 %v474_v46 }
  0x7c   :  { %479 = vmatprep.subr.bf16.mxu1 %v478_v49 }
  0x7e   :  { %381 = vmatmul.mubr.f32.vlgmr.msra.gmra.mrb[0].mxu0 %v86_v43 }
  0x7f   :  { %481 = vmatpush3.bf16.msra.mxu1 %v478_v49 }
 0x151   :  { %v382_v51 = vpop.f32.mrb[0].mxu0 }
 0x152   :  { %v182_v52 = vadd.f32 %v382_v51, %v310_v50  ;;  %v176_v53 = vpop.f32.mrb[1].mxu0 }
 0x153   :  { %v177_v54 = vadd.f32 %v310_v50, %v176_v53 }
 0x154   :  { %v188_v55 = vmul.f32 0.01, %v182_v52  ;;  %vm186_vm1 = vcmp.ge.f32.partialorder %v182_v52, 0.0 }
 0x155   :  { %vm185_vm0 = vcmp.ge.f32.partialorder %v177_v54, 0.0  ;;  %v187_v56 = vmul.f32 0.01, %v177_v54 }
 0x156   :  { %v190_v58 = vsel %vm186_vm1, %v182_v52, %v188_v55 }
 0x157   :  { %v189_v57 = vsel %vm185_vm0, %v177_v54, %v187_v56 }
 0x158   :  { %415 = vmatprep.mubr.f32.mxu1 %v189_v57 }
 0x159   :  { %416 = vmatmul.mubr.f32.vlgmr.msra.gmra.mrb[0].mxu1 %v190_v58 }
 0x22c   :  { %v417_v60 = vpop.f32.mrb[0].mxu1 }
 0x22d   :  { %v286_v61 = vadd.f32 %v417_v60, %v311_v59  ;;  %v280_v62 = vpop.f32.mrb[1].mxu1 }
 0x22e   :  { %v281_v63 = vadd.f32 %v311_v59, %v280_v62 }
 0x22f   :  { %290 = vst [vmem:[#allocation11 + $0x8] sm:$0xff] %v286_v61 }
 0x230   :  { %289 = vst [vmem:[#allocation11] sm:$0xff] %v281_v63 }
 0x231   :  { %611 = shalt.err (!%p608_p2)
}
 0x232   :  { %s612_s9 = scalar_lea.hbm %s764_s5, 256 }
 0x233   :  { %p613_p3 = scmp.ne.s32.totalorder %s764_s5, %s612_s9  ;;  %p616_p4 = scmp.lt.u32.totalorder %s612_s9, %s764_s5 }
 0x235   :  { %p618_p5 = pnand %p616_p4, %p613_p3 }
 0x237   :  { %621 = shalt.err (!%p618_p5)
}
 0x238   :  { %302 = dma.vmem_to_hbm [thread:$0]  %s297_s3, 256, %s764_s5, [#allocation4], %s632_s30, %s632_s30, %s633_s6  }
 0x239   :  { %628 = dma.done.wait [#allocation4], 256  }
 0x23a   :  { %629 = vsyncadd [#allocation4], 4294967040 }
 0x23b   :  { %306 = vsyncpa [#allocation3], 1 }
 0x23c   :  { %307 = vsyncpa [#allocation6], 1 }
 0x23d   :  { %308 = vsyncpa [#allocation9], 1 }
 0x23e   :  { %309 = vsyncpa [#allocation4], 1 }

// kernel: tpu_custom_call.1
= control target key start
LH: loop header
LB: loop body
LE: loop exit
PB: predicated region body
PF: predicated region fallthrough
CT: control target
= control target key end

     0   :  { %10 = vsyncpa [#allocation3], 0  ;;  %s759_s0 = inlined_call_operand.hbm [shape: f32[16,128], index: 0, kind: input, shape index: {}]   ;;  %s760_s1 = inlined_call_operand.hbm [shape: f32[128,128], index: 1, kind: input, shape index: {}]   ;;  %s761_s2 = inlined_call_operand.hbm [shape: f32[1,128], index: 2, kind: input, shape index: {}]   ;;  %s762_s3 = inlined_call_operand.hbm [shape: f32[128,128], index: 3, kind: input, shape index: {}]   ;;  %s763_s4 = inlined_call_operand.hbm [shape: f32[1,128], index: 4, kind: input, shape index: {}]   ;;  %s764_s5 = inlined_call_operand.hbm [shape: f32[16,128], index: 5, kind: output, shape index: {}]  }
   0x1   :  { %11 = vsyncpa [#allocation6], 0 }
   0x2   :  { %12 = vsyncpa [#allocation9], 0 }
   0x3   :  { %13 = vsyncpa [#allocation4], 0  ;;  %s630_s18 = smov [#allocation5]   ;;  %s631_s20 = smov [#allocation8]  }
   0x4   :  { %s31_s19 = sshll.u32 %s630_s18, 4  ;;  %s53_s21 = sshll.u32 %s631_s20, 4  ;;  %s32_s19 = int_to_ptr.vmem [resolvable:$true] %s31_s19  ;;  %s668_s21 = int_to_ptr.vmem [resolvable:$true] %s53_s21 }
   0x5   :  { %s490_s24 = scalar_lea.hbm %s760_s1, 2048 }
   0x6   :  { %p491_p0 = scmp.ne.s32.totalorder %s760_s1, %s490_s24  ;;  %p494_p1 = scmp.lt.u32.totalorder %s490_s24, %s760_s1 }
   0x8   :  { %p496_p2 = pnand %p494_p1, %p491_p0 }
   0xa   :  { %499 = shalt.err (!%p496_p2)
}
   0xb   :  { %s500_s29 = scalar_lea.vmem %s32_s19, 2048  ;;  %p505_p4 = scmp.lt.s32.totalorder %s32_s19, %s32_s19 }
   0xc   :  { %p501_p3 = scmp.ne.s32.totalorder %s32_s19, %s500_s29  ;;  %p506_p5 = scmp.lt.s32.totalorder %s500_s29, %s500_s29 }
   0xe   :  { %p507_p6 = por %p506_p5, %p505_p4 }
  0x10   :  { %p508_p7 = pnand %p507_p6, %p501_p3 }
  0x12   :  { %511 = shalt.err (!%p508_p7)
}
  0x13   :  { %s632_s30 = smov 128   ;;  %s633_s6 = smov 8  }
  0x14   :  { %37 = dma.hbm_to_vmem [thread:$0]  %s760_s1, 2048, %s32_s19, [#allocation6], %s632_s30, %s632_s30, %s633_s6  }
  0x15   :  { %s512_s11 = scalar_lea.hbm %s762_s3, 2048 }
  0x16   :  { %p513_p8 = scmp.ne.s32.totalorder %s762_s3, %s512_s11  ;;  %p516_p9 = scmp.lt.u32.totalorder %s512_s11, %s762_s3 }
  0x18   :  { %p518_p10 = pnand %p516_p9, %p513_p8 }
  0x1a   :  { %521 = shalt.err (!%p518_p10)
}
  0x1b   :  { %s522_s16 = scalar_lea.vmem %s668_s21, 2048  ;;  %p527_p12 = scmp.lt.s32.totalorder %s668_s21, %s668_s21 }
  0x1c   :  { %p523_p11 = scmp.ne.s32.totalorder %s668_s21, %s522_s16  ;;  %p528_p13 = scmp.lt.s32.totalorder %s522_s16, %s522_s16 }
  0x1e   :  { %p529_p0 = por %p528_p13, %p527_p12 }
  0x20   :  { %p530_p1 = pnand %p529_p0, %p523_p11 }
  0x22   :  { %533 = shalt.err (!%p530_p1)
}
  0x23   :  { %59 = dma.hbm_to_vmem [thread:$0]  %s762_s3, 2048, %s668_s21, [#allocation9], %s632_s30, %s632_s30, %s633_s6  }
  0x24   :  { %s634_s18 = smov [#allocation2]   ;;  %s635_s20 = smov [#allocation7]  }
  0x25   :  { %s19_s19 = sshll.u32 %s634_s18, 4  ;;  %s44_s22 = sshll.u32 %s635_s20, 4  ;;  %s20_s19 = int_to_ptr.vmem [resolvable:$true] %s19_s19  ;;  %s45_s22 = int_to_ptr.vmem [resolvable:$true] %s44_s22 }
  0x26   :  { %s534_s25 = scalar_lea.hbm %s759_s0, 256 }
  0x27   :  { %p535_p2 = scmp.ne.s32.totalorder %s759_s0, %s534_s25  ;;  %p538_p3 = scmp.lt.u32.totalorder %s534_s25, %s759_s0 }
  0x29   :  { %p540_p4 = pnand %p538_p3, %p535_p2 }
  0x2b   :  { %543 = shalt.err (!%p540_p4)
}
  0x2c   :  { %s544_s3 = scalar_lea.vmem %s20_s19, 256  ;;  %p549_p6 = scmp.lt.s32.totalorder %s20_s19, %s20_s19 }
  0x2d   :  { %p545_p5 = scmp.ne.s32.totalorder %s20_s19, %s544_s3  ;;  %p550_p7 = scmp.lt.s32.totalorder %s544_s3, %s544_s3 }
  0x2f   :  { %p551_p8 = por %p550_p7, %p549_p6 }
  0x31   :  { %p552_p9 = pnand %p551_p8, %p545_p5 }
  0x33   :  { %555 = shalt.err (!%p552_p9)
}
  0x34   :  { %25 = dma.hbm_to_vmem [thread:$0]  %s759_s0, 256, %s20_s19, [#allocation3], %s632_s30, %s632_s30, %s633_s6  }
  0x35   :  { %s556_s10 = scalar_lea.hbm %s761_s2, 16 }
  0x36   :  { %p557_p10 = scmp.ne.s32.totalorder %s761_s2, %s556_s10  ;;  %p560_p11 = scmp.lt.u32.totalorder %s556_s10, %s761_s2 }
  0x38   :  { %p562_p12 = pnand %p560_p11, %p557_p10 }
  0x3a   :  { %565 = shalt.err (!%p562_p12)
}
  0x3b   :  { %s566_s15 = scalar_lea.vmem %s45_s22, 16  ;;  %s570_s16 = scalar_lea.vmem %s45_s22, 32 }
  0x3c   :  { %p567_p13 = scmp.ne.s32.totalorder %s45_s22, %s566_s15  ;;  %p571_p0 = scmp.lt.s32.totalorder %s45_s22, %s45_s22 }
  0x3d   :  { %p572_p1 = scmp.lt.s32.totalorder %s570_s16, %s566_s15 }
  0x3f   :  { %p573_p2 = por %p572_p1, %p571_p0 }
  0x41   :  { %p574_p3 = pnand %p573_p2, %p567_p13 }
  0x43   :  { %577 = shalt.err (!%p574_p3)
}
  0x44   :  { %47 = dma.hbm_to_vmem [thread:$0]  %s761_s2, 16, %s45_s22, [#allocation6]  }
  0x45   :  { %s636_s17 = smov [#allocation10]   ;;  %s578_s23 = scalar_lea.hbm %s763_s4, 16 }
  0x46   :  { %s66_s18 = sshll.u32 %s636_s17, 4  ;;  %p579_p4 = scmp.ne.s32.totalorder %s763_s4, %s578_s23  ;;  %s67_s18 = int_to_ptr.vmem [resolvable:$true] %s66_s18 }
  0x47   :  { %p582_p5 = scmp.lt.u32.totalorder %s578_s23, %s763_s4 }
  0x49   :  { %p584_p6 = pnand %p582_p5, %p579_p4 }
  0x4b   :  { %587 = shalt.err (!%p584_p6)
}
  0x4c   :  { %s588_s28 = scalar_lea.vmem %s67_s18, 16  ;;  %s592_s2 = scalar_lea.vmem %s67_s18, 32 }
  0x4d   :  { %p589_p7 = scmp.ne.s32.totalorder %s67_s18, %s588_s28  ;;  %p593_p8 = scmp.lt.s32.totalorder %s67_s18, %s67_s18 }
  0x4e   :  { %p594_p9 = scmp.lt.s32.totalorder %s592_s2, %s588_s28 }
  0x50   :  { %p595_p10 = por %p594_p9, %p593_p8 }
  0x52   :  { %p596_p11 = pnand %p595_p10, %p589_p7 }
  0x54   :  { %599 = shalt.err (!%p596_p11)
}
  0x55   :  { %69 = dma.hbm_to_vmem [thread:$0]  %s763_s4, 16, %s67_s18, [#allocation9]  }
  0x56   :  { %622 = dma.done.wait [#allocation3], 256  }
  0x57   :  { %623 = vsyncadd [#allocation3], 4294967040 }
  0x58   :  { %624 = dma.done.wait [#allocation6], 2064  }
  0x59   :  { %625 = vsyncadd [#allocation6], 4294965232 }
  0x5a   :  { %626 = dma.done.wait [#allocation9], 2064  }
  0x5b   :  { %627 = vsyncadd [#allocation9], 4294965232  ;;  %v87_v0 = vld [vmem:[#allocation5] sm:$0xff]  ;;  %v88_v1 = vld [vmem:[#allocation5 + $0x8] sm:$0xff]  ;;  %s637_s4 = smov [#allocation11]  }
  0x5c   :  { %v89_v2 = vld [vmem:[#allocation5 + $0x10] sm:$0xff]  ;;  %v418_v3 = vpack.c.bf16 %v88_v1, %v87_v0  ;;  %v90_v4 = vld [vmem:[#allocation5 + $0x18] sm:$0xff]  ;;  %v91_v6 = vld [vmem:[#allocation5 + $0x20] sm:$0xff]  ;;  %s296_s3 = sshll.u32 %s637_s4, 4  ;;  %s297_s3 = int_to_ptr.vmem [resolvable:$true] %s296_s3 }
  0x5d   :  { %v422_v5 = vpack.c.bf16 %v90_v4, %v89_v2  ;;  %v92_v7 = vld [vmem:[#allocation5 + $0x28] sm:$0xff]  ;;  %v93_v9 = vld [vmem:[#allocation5 + $0x30] sm:$0xff]  ;;  %v94_v10 = vld [vmem:[#allocation5 + $0x38] sm:$0xff]  ;;  %s600_s21 = scalar_lea.vmem %s297_s3, 256  ;;  %p605_p13 = scmp.lt.s32.totalorder %s297_s3, %s297_s3 }
  0x5e   :  { %419 = vmatprep.subr.bf16.mxu0 %v418_v3  ;;  %v426_v8 = vpack.c.bf16 %v92_v7, %v91_v6  ;;  %v85_v11 = vld [vmem:[#allocation2] sm:$0xff]  ;;  %v191_v12 = vld [vmem:[#allocation8] sm:$0xff]  ;;  %v194_v16 = vld [vmem:[#allocation8 + $0x18] sm:$0xff]  ;;  %v430_v20 = vpack.c.bf16 %v94_v10, %v93_v9  ;;  %p601_p12 = scmp.ne.s32.totalorder %s297_s3, %s600_s21  ;;  %p606_p0 = scmp.lt.s32.totalorder %s600_s21, %s600_s21 }
  0x5f   :  { %421 = vmatpush3.bf16.msra.mxu0 %v418_v3  ;;  %380 = vmatprep.mubr.f32.mxu0 %v85_v11  ;;  %v192_v13 = vld [vmem:[#allocation8 + $0x8] sm:$0xff]  ;;  %v193_v14 = vld [vmem:[#allocation8 + $0x10] sm:$0xff]  ;;  %v195_v18 = vld [vmem:[#allocation8 + $0x20] sm:$0xff] }
  0x60   :  { %423 = vmatprep.subr.bf16.mxu0 %v422_v5  ;;  %v450_v15 = vpack.c.bf16 %v192_v13, %v191_v12  ;;  %v454_v17 = vpack.c.bf16 %v194_v16, %v193_v14  ;;  %v196_v19 = vld [vmem:[#allocation8 + $0x28] sm:$0xff]  ;;  %v95_v21 = vld [vmem:[#allocation5 + $0x40] sm:$0xff]  ;;  %v197_v24 = vld [vmem:[#allocation8 + $0x30] sm:$0xff]  ;;  %p607_p1 = por %p606_p0, %p605_p13 }
  0x61   :  { %v96_v22 = vld [vmem:[#allocation5 + $0x48] sm:$0xff]  ;;  %v458_v23 = vpack.c.bf16 %v196_v19, %v195_v18  ;;  %v198_v25 = vld [vmem:[#allocation8 + $0x38] sm:$0xff]  ;;  %v97_v27 = vld [vmem:[#allocation5 + $0x50] sm:$0xff] }
  0x62   :  { %451 = vmatprep.subr.bf16.mxu1 %v450_v15  ;;  %v434_v26 = vpack.c.bf16 %v96_v22, %v95_v21  ;;  %v98_v28 = vld [vmem:[#allocation5 + $0x58] sm:$0xff]  ;;  %v462_v29 = vpack.c.bf16 %v198_v25, %v197_v24  ;;  %v199_v30 = vld [vmem:[#allocation8 + $0x40] sm:$0xff]  ;;  %v200_v31 = vld [vmem:[#allocation8 + $0x48] sm:$0xff]  ;;  %p608_p2 = pnand %p607_p1, %p601_p12 }
  0x63   :  { %425 = vmatpush3.bf16.msra.mxu0 %v422_v5  ;;  %453 = vmatpush3.bf16.msra.mxu1 %v450_v15  ;;  %v438_v32 = vpack.c.bf16 %v98_v28, %v97_v27  ;;  %v99_v33 = vld [vmem:[#allocation5 + $0x60] sm:$0xff]  ;;  %v100_v34 = vld [vmem:[#allocation5 + $0x68] sm:$0xff]  ;;  %v466_v35 = vpack.c.bf16 %v200_v31, %v199_v30  ;;  %v201_v36 = vld [vmem:[#allocation8 + $0x50] sm:$0xff] }
  0x64   :  { %427 = vmatprep.subr.bf16.mxu0 %v426_v8  ;;  %455 = vmatprep.subr.bf16.mxu1 %v454_v17  ;;  %v202_v37 = vld [vmem:[#allocation8 + $0x58] sm:$0xff]  ;;  %v442_v38 = vpack.c.bf16 %v100_v34, %v99_v33  ;;  %v101_v39 = vld [vmem:[#allocation5 + $0x70] sm:$0xff]  ;;  %v203_v44 = vld [vmem:[#allocation8 + $0x60] sm:$0xff] }
  0x65   :  { %v102_v40 = vld [vmem:[#allocation5 + $0x78] sm:$0xff]  ;;  %v470_v41 = vpack.c.bf16 %v202_v37, %v201_v36  ;;  %v204_v45 = vld [vmem:[#allocation8 + $0x68] sm:$0xff]  ;;  %v310_v50 = vld [vmem:[#allocation7] ss:$0 sm:$0xff] }
  0x66   :  { %v446_v42 = vpack.c.bf16 %v102_v40, %v101_v39  ;;  %v86_v43 = vld [vmem:[#allocation2 + $0x8] sm:$0xff]  ;;  %v474_v46 = vpack.c.bf16 %v204_v45, %v203_v44  ;;  %v311_v59 = vld [vmem:[#allocation10] ss:$0 sm:$0xff] }
  0x67   :  { %429 = vmatpush3.bf16.msra.mxu0 %v426_v8  ;;  %457 = vmatpush3.bf16.msra.mxu1 %v454_v17  ;;  %v205_v47 = vld [vmem:[#allocation8 + $0x70] sm:$0xff]  ;;  %v206_v48 = vld [vmem:[#allocation8 + $0x78] sm:$0xff] }
  0x68   :  { %431 = vmatprep.subr.bf16.mxu0 %v430_v20  ;;  %459 = vmatprep.subr.bf16.mxu1 %v458_v23  ;;  %v478_v49 = vpack.c.bf16 %v206_v48, %v205_v47 }
  0x6b   :  { %433 = vmatpush3.bf16.msra.mxu0 %v430_v20  ;;  %461 = vmatpush3.bf16.msra.mxu1 %v458_v23 }
  0x6c   :  { %435 = vmatprep.subr.bf16.mxu0 %v434_v26  ;;  %463 = vmatprep.subr.bf16.mxu1 %v462_v29 }
  0x6f   :  { %437 = vmatpush3.bf16.msra.mxu0 %v434_v26  ;;  %465 = vmatpush3.bf16.msra.mxu1 %v462_v29 }
  0x70   :  { %439 = vmatprep.subr.bf16.mxu0 %v438_v32  ;;  %467 = vmatprep.subr.bf16.mxu1 %v466_v35 }
  0x73   :  { %441 = vmatpush3.bf16.msra.mxu0 %v438_v32  ;;  %469 = vmatpush3.bf16.msra.mxu1 %v466_v35 }
  0x74   :  { %443 = vmatprep.subr.bf16.mxu0 %v442_v38  ;;  %471 = vmatprep.subr.bf16.mxu1 %v470_v41 }
  0x77   :  { %445 = vmatpush3.bf16.msra.mxu0 %v442_v38  ;;  %473 = vmatpush3.bf16.msra.mxu1 %v470_v41 }
  0x78   :  { %447 = vmatprep.subr.bf16.mxu0 %v446_v42  ;;  %475 = vmatprep.subr.bf16.mxu1 %v474_v46 }
  0x7b   :  { %449 = vmatpush3.bf16.msra.mxu0 %v446_v42  ;;  %477 = vmatpush3.bf16.msra.mxu1 %v474_v46 }
  0x7c   :  { %479 = vmatprep.subr.bf16.mxu1 %v478_v49 }
  0x7e   :  { %381 = vmatmul.mubr.f32.vlgmr.msra.gmra.mrb[0].mxu0 %v86_v43 }
  0x7f   :  { %481 = vmatpush3.bf16.msra.mxu1 %v478_v49 }
 0x151   :  { %v382_v51 = vpop.f32.mrb[0].mxu0 }
 0x152   :  { %v182_v52 = vadd.f32 %v382_v51, %v310_v50  ;;  %v176_v53 = vpop.f32.mrb[1].mxu0 }
 0x153   :  { %v177_v54 = vadd.f32 %v310_v50, %v176_v53 }
 0x154   :  { %v188_v55 = vmul.f32 0.01, %v182_v52  ;;  %vm186_vm1 = vcmp.ge.f32.partialorder %v182_v52, 0.0 }
 0x155   :  { %vm185_vm0 = vcmp.ge.f32.partialorder %v177_v54, 0.0  ;;  %v187_v56 = vmul.f32 0.01, %v177_v54 }
 0x156   :  { %v190_v58 = vsel %vm186_vm1, %v182_v52, %v188_v55 }
 0x157   :  { %v189_v57 = vsel %vm185_vm0, %v177_v54, %v187_v56 }
 0x158   :  { %415 = vmatprep.mubr.f32.mxu1 %v189_v57 }
 0x159   :  { %416 = vmatmul.mubr.f32.vlgmr.msra.gmra.mrb[0].mxu1 %v190_v58 }
 0x22c   :  { %v417_v60 = vpop.f32.mrb[0].mxu1 }
 0x22d   :  { %v286_v61 = vadd.f32 %v417_v60, %v311_v59  ;;  %v280_v62 = vpop.f32.mrb[1].mxu1 }
 0x22e   :  { %v281_v63 = vadd.f32 %v311_v59, %v280_v62 }
 0x22f   :  { %290 = vst [vmem:[#allocation11 + $0x8] sm:$0xff] %v286_v61 }
 0x230   :  { %289 = vst [vmem:[#allocation11] sm:$0xff] %v281_v63 }
 0x231   :  { %611 = shalt.err (!%p608_p2)
}
 0x232   :  { %s612_s9 = scalar_lea.hbm %s764_s5, 256 }
 0x233   :  { %p613_p3 = scmp.ne.s32.totalorder %s764_s5, %s612_s9  ;;  %p616_p4 = scmp.lt.u32.totalorder %s612_s9, %s764_s5 }
 0x235   :  { %p618_p5 = pnand %p616_p4, %p613_p3 }
 0x237   :  { %621 = shalt.err (!%p618_p5)
}
 0x238   :  { %302 = dma.vmem_to_hbm [thread:$0]  %s297_s3, 256, %s764_s5, [#allocation4], %s632_s30, %s632_s30, %s633_s6  }
 0x239   :  { %628 = dma.done.wait [#allocation4], 256  }
 0x23a   :  { %629 = vsyncadd [#allocation4], 4294967040 }
 0x23b   :  { %306 = vsyncpa [#allocation3], 1 }
 0x23c   :  { %307 = vsyncpa [#allocation6], 1 }
 0x23d   :  { %308 = vsyncpa [#allocation9], 1 }
 0x23e   :  { %309 = vsyncpa [#allocation4], 1 }

</bundles_post_ra>
